<compile_context>
chip_gen: v7x
topology: tpu7x:2x2x1
jax: 0.10.0
libtpu: 0.0.40
codegen_flags: <defaults>
</compile_context>

<pallas_src>
import functools
import math

import jax
import jax.numpy as jnp
from jax import lax
from jax.experimental import pallas as pl
from jax.experimental.pallas import tpu as pltpu


def _round_up(x: int, m: int) -> int:
    return (x + m - 1) // m * m


def _arc_margin_kernel(x_ref, xinv_ref, w_ref, o_ref):
    """One (tm, tn) tile of cosine = normalize(x) @ normalize(w).T.

    x_ref:    (tm, D)  features tile, compute dtype (cast in the wrapper)
    xinv_ref: (tm, 1)  f32 precomputed 1 / max(||x_row||, 1e-12)
    w_ref:    (tn, D)  weight tile, compute dtype
    o_ref:    (tm, tn) output tile
    """
    x = x_ref[...]
    w = w_ref[...]

    # Row-normalize the weight tile in-kernel: the tile is already in VMEM, so
    # this is cheap filler under the MXU and avoids an extra full HBM pass
    # over the weight in the wrapper.  (tn, 1) broadcasts along lanes.
    wf = w.astype(jnp.float32)
    w_inv = lax.rsqrt(jnp.maximum(jnp.sum(wf * wf, axis=-1, keepdims=True),
                                  jnp.float32(1e-24)))            # (tn, 1)
    wn = (wf * w_inv).astype(w.dtype)

    # MXU matmul contracting the last (lane) dim of both operands directly.
    dot = lax.dot_general(x, wn,
                          dimension_numbers=(((1,), (1,)), ((), ())),
                          preferred_element_type=jnp.float32)     # (tm, tn)

    # Scale rows by the precomputed inverse feature norms.
    o_ref[...] = (dot * xinv_ref[...]).astype(o_ref.dtype)


def arc_margin_product(features, weight, *, compute_dtype=jnp.bfloat16,
                       out_dtype=jnp.float32, tm=None, tn=None):
    """cosine = normalize(features) @ normalize(weight).T -> (B, out_features)."""
    B, D = features.shape
    C, D2 = weight.shape
    assert D == D2, "in_features mismatch"

    cbytes = jnp.dtype(compute_dtype).itemsize
    obytes = jnp.dtype(out_dtype).itemsize

    # VMEM budget from the actual generation (v5e/v6e: 128 MiB, v7x: 64 MiB).
    try:
        vmem_cap = int(getattr(pltpu.get_tpu_info(), "vmem_capacity_bytes",
                               64 * 1024 * 1024))
    except Exception:  # interpret mode / unknown target
        vmem_cap = 64 * 1024 * 1024
    budget = (vmem_cap * 7) // 10

    # tm: make the feature tile fully VMEM-resident when possible (its block
    # index then never changes along the inner grid axis -> DMA'd only once).
    if tm is None:
        tm = min(_round_up(B, 8), 512)
        while tm > 8 and 2 * tm * D * cbytes > budget // 3:
            tm = _round_up(tm // 2, 8)
    B_pad = _round_up(B, tm)

    # tn: as large as the VMEM budget allows (amortizes the ~0.35us per-step
    # pipeline overhead and gives long lane-dense weight DMAs); prefer a tn
    # that divides C so the big weight is never padded/copied in HBM.
    if tn is None:
        denom = 2 * (D * cbytes + tm * obytes)
        avail = budget - 2 * (tm * D * cbytes + tm * 4)
        max_tn = max(128, avail // denom) if avail > 0 else 128
        if C <= 2048 and C <= max_tn:
            tn = C                                    # single weight tile
        else:
            tn = None
            for cand in (4096, 2048, 1024, 512, 256, 128):
                if cand <= max_tn and C % cand == 0:
                    tn = cand
                    break
            if tn is None:                            # ragged C: pad last tile
                tn = max(128, (min(2048, max_tn) // 128) * 128)
    C_pad = _round_up(C, tn)
    n_c, n_b = C_pad // tn, B_pad // tm

    # Inverse feature-row norms, computed once (matches 1 / max(||x||, 1e-12)).
    xf = features.astype(jnp.float32)
    x_inv = lax.rsqrt(jnp.maximum(jnp.sum(xf * xf, axis=1, keepdims=True),
                                  jnp.float32(1e-24)))            # (B, 1)

    # Cast operands to compute_dtype in the wrapper (halves the kernel's HBM
    # stream for f32 weights; no-op when already stored in compute_dtype),
    # and pad only when the tile sizes require it.
    x_c = features.astype(compute_dtype)
    w_c = weight.astype(compute_dtype)
    if B_pad != B:
        x_c = jnp.pad(x_c, ((0, B_pad - B), (0, 0)))
        x_inv = jnp.pad(x_inv, ((0, B_pad - B), (0, 0)))
    if C_pad != C:
        w_c = jnp.pad(w_c, ((0, C_pad - C), (0, 0)))

    # Double-buffered VMEM footprint estimate and generation-aware limit.
    est = 2 * (tm * D * cbytes + tn * D * cbytes + tm * 4 + tm * tn * obytes)
    vmem_limit = int(min((vmem_cap * 3) // 4,
                         max((est * 3) // 2, 32 * 1024 * 1024)))

    cost = pl.CostEstimate(
        flops=2 * B_pad * C_pad * D,
        transcendentals=C_pad * n_b + B,
        bytes_accessed=(x_c.size * cbytes + x_inv.size * 4
                        + w_c.size * cbytes + B_pad * C_pad * obytes),
    )

    out = pl.pallas_call(
        _arc_margin_kernel,
        out_shape=jax.ShapeDtypeStruct((B_pad, C_pad), out_dtype),
        grid_spec=pltpu.PrefetchScalarGridSpec(
            num_scalar_prefetch=0,
            # B innermost: the big weight streams through VMEM exactly once
            # per call; the (resident) feature tile's index never changes.
            grid=(n_c, n_b),
            in_specs=[
                pl.BlockSpec((tm, D), lambda j, i: (i, 0)),   # features tile
                pl.BlockSpec((tm, 1), lambda j, i: (i, 0)),   # 1/||x_row||
                pl.BlockSpec((tn, D), lambda j, i: (j, 0)),   # weight tile
            ],
            out_specs=pl.BlockSpec((tm, tn), lambda j, i: (i, j)),
        ),
        compiler_params=pltpu.CompilerParams(
            dimension_semantics=("parallel", "parallel"),
            vmem_limit_bytes=vmem_limit,
        ),
        cost_estimate=cost,
    )(x_c, x_inv, w_c)

    return out[:B, :C]


def init_arc_margin_weight(key, in_features: int, out_features: int) -> jax.Array:
    """Deterministic equivalent of reset_parameters: U(-stdv, stdv)."""
    stdv = 1.0 / math.sqrt(in_features)
    return jax.random.uniform(
        key, (out_features, in_features), dtype=jnp.float32,
        minval=-stdv, maxval=stdv,
    )


if __name__ == "__main__":
    key = jax.random.PRNGKey(0)
    k_x, k_w, k_x2, k_w2 = jax.random.split(key, 4)

    def ref(x, w):
        xn = x / jnp.maximum(jnp.linalg.norm(x, axis=1, keepdims=True), 1e-12)
        wn = w / jnp.maximum(jnp.linalg.norm(w, axis=1, keepdims=True), 1e-12)
        return xn @ wn.T

    # Small shapes consistent with the module.
    B, in_features, out_features = 8, 32, 16
    features = jax.random.normal(k_x, (B, in_features), dtype=jnp.float32)
    weight = init_arc_margin_weight(k_w, in_features, out_features)
    expected = ref(features, weight)

    # Default path: bf16 MXU operands, f32 accumulate.
    cos_bf16 = arc_margin_product(features, weight)
    jax.block_until_ready(cos_bf16)
    assert cos_bf16.shape == (B, out_features)
    assert jnp.allclose(cos_bf16, expected, atol=3e-2, rtol=3e-2), (
        float(jnp.max(jnp.abs(cos_bf16 - expected))))

    # f32 operands: tight numerical check.
    cos_f32 = arc_margin_product(features, weight, compute_dtype=jnp.float32)
    jax.block_until_ready(cos_f32)
    assert jnp.allclose(cos_f32, expected, atol=1e-4, rtol=1e-4), (
        float(jnp.max(jnp.abs(cos_f32 - expected))))

    # Multi-tile / ragged (padded) grid path with explicit small tiles.
    B2, D2, C2 = 10, 256, 300
    x2 = jax.random.normal(k_x2, (B2, D2), dtype=jnp.float32)
    w2 = init_arc_margin_weight(k_w2, D2, C2)
    exp2 = ref(x2, w2)
    got2 = arc_margin_product(x2, w2, compute_dtype=jnp.float32, tm=8, tn=128)
    jax.block_until_ready(got2)
    assert got2.shape == (B2, C2)
    assert jnp.allclose(got2, exp2, atol=1e-4, rtol=1e-4), (
        float(jnp.max(jnp.abs(got2 - exp2))))

    print("KERNEL_OK")
</pallas_src>

<mosaic_0001>
module attributes {stable_mosaic.version = 11 : i64} {
  func.func @_arc_margin_kernel(%arg0: i32, %arg1: i32, %arg2: memref<8x32xbf16, #tpu.memory_space<vmem>>, %arg3: memref<8x1xf32, #tpu.memory_space<vmem>>, %arg4: memref<16x32xbf16, #tpu.memory_space<vmem>>, %arg5: memref<8x16xf32, #tpu.memory_space<vmem>>) attributes {dimension_semantics = [#tpu.dimension_semantics<parallel>, #tpu.dimension_semantics<parallel>], iteration_bounds = array<i64: 1, 1>, scalar_prefetch = 0 : i64, scratch_operands = 0 : i64, tpu.core_type = #tpu.core_type<tc>, window_params = [{transform_indices = @transform_0, window_bounds = array<i64: 8, 32>}, {transform_indices = @transform_1, window_bounds = array<i64: 8, 1>}, {transform_indices = @transform_2, window_bounds = array<i64: 16, 32>}, {transform_indices = @transform_3, window_bounds = array<i64: 8, 16>}]} {
    %c0 = arith.constant 0 : index
    %c0_0 = arith.constant 0 : index
    %0 = vector.load %arg2[%c0, %c0_0] : memref<8x32xbf16, #tpu.memory_space<vmem>>, vector<8x32xbf16>
    %c0_1 = arith.constant 0 : index
    %c0_2 = arith.constant 0 : index
    %1 = vector.load %arg4[%c0_1, %c0_2] : memref<16x32xbf16, #tpu.memory_space<vmem>>, vector<16x32xbf16>
    %2 = arith.extf %1 : vector<16x32xbf16> to vector<16x32xf32>
    %3 = arith.mulf %2, %2 : vector<16x32xf32>
    %cst = arith.constant dense<0.000000e+00> : vector<16xf32>
    %4 = vector.multi_reduction <add>, %3, %cst [1] : vector<16x32xf32> to vector<16xf32>
    %5 = vector.shape_cast %4 : vector<16xf32> to vector<16x1xf32>
    %cst_3 = arith.constant 1.000000e-24 : f32
    %6 = vector.broadcast %cst_3 : f32 to vector<16x1xf32>
    %7 = arith.maximumf %5, %6 : vector<16x1xf32>
    %8 = math.rsqrt %7 : vector<16x1xf32>
    %9 = vector.broadcast %8 : vector<16x1xf32> to vector<16x32xf32>
    %10 = arith.mulf %2, %9 : vector<16x32xf32>
    %11 = arith.truncf %10 : vector<16x32xf32> to vector<16x32xbf16>
    %cst_4 = arith.constant dense<0.000000e+00> : vector<8x16xf32>
    %12 = tpu.matmul %0, %11, %cst_4 {dimension_numbers = #tpu.dot_dimension_numbers<[1], [1], [0], [0], [0, 0, 1, 0], [], []>} : vector<8x32xbf16>, vector<16x32xbf16>, vector<8x16xf32> -> vector<8x16xf32>
    %c0_5 = arith.constant 0 : index
    %c0_6 = arith.constant 0 : index
    %13 = vector.load %arg3[%c0_5, %c0_6] : memref<8x1xf32, #tpu.memory_space<vmem>>, vector<8x1xf32>
    %14 = vector.broadcast %13 : vector<8x1xf32> to vector<8x16xf32>
    %15 = arith.mulf %12, %14 : vector<8x16xf32>
    %c0_7 = arith.constant 0 : index
    %c0_8 = arith.constant 0 : index
    %16 = vector.load %arg5[%c0_7, %c0_8] : memref<8x16xf32, #tpu.memory_space<vmem>>, vector<8x16xf32>
    tpu.vector_store %arg5[%c0_7, %c0_8], %15 {strides = array<i32>} : memref<8x16xf32, #tpu.memory_space<vmem>>, vector<8x16xf32>,
    return
  }
  func.func @transform_0(%arg0: i32, %arg1: i32) -> (i32, i32) {
    %c0_i32 = arith.constant 0 : i32
    %c0_i32_0 = arith.constant 0 : i32
    return %arg1, %c0_i32 : i32, i32
  }
  func.func @transform_1(%arg0: i32, %arg1: i32) -> (i32, i32) {
    %c0_i32 = arith.constant 0 : i32
    %c0_i32_0 = arith.constant 0 : i32
    return %arg1, %c0_i32 : i32, i32
  }
  func.func @transform_2(%arg0: i32, %arg1: i32) -> (i32, i32) {
    %c0_i32 = arith.constant 0 : i32
    %c0_i32_0 = arith.constant 0 : i32
    return %arg0, %c0_i32 : i32, i32
  }
  func.func @transform_3(%arg0: i32, %arg1: i32) -> (i32, i32) {
    %c0_i32 = arith.constant 0 : i32
    return %arg1, %arg0 : i32, i32
  }
}

</mosaic_0001>

<bundles_post_ra>
// kernel: tpu_custom_call.1
= control target key start
LH: loop header
LB: loop body
LE: loop exit
PB: predicated region body
PF: predicated region fallthrough
CT: control target
= control target key end

     0   :  { %s202_s0 = inlined_call_operand.vmem [shape: bf16[8,32], index: 0, kind: input, shape index: {}]   ;;  %s203_s1 = inlined_call_operand.vmem [shape: f32[8,1], index: 1, kind: input, shape index: {}]   ;;  %s204_s2 = inlined_call_operand.vmem [shape: bf16[16,32], index: 2, kind: input, shape index: {}]   ;;  %s205_s3 = inlined_call_operand.hbm [shape: f32[8,16], index: 3, kind: output, shape index: {}]  }
   0x1   :  { %v108_v0 = vld [vmem:[%s204_s2] sm:$0xff]  }
   0x2   :  { %8 = vsyncpa [#allocation3], 0  ;;  %v109_v1 = vunpack.c.l.bf16 %v108_v0  ;;  %v110_v2 = vunpack.c.h.bf16 %v108_v0  ;;  %vm23_vm0 = vcmask 261120   ;;  %v153_v7 = vmov 0.0   ;;  %v83_v8 = vld [vmem:[%s203_s1] sm:$0xff]  ;;  %s156_s16 = smov [#allocation2]  }
   0x3   :  { %113 = vmatprep.subr.bf16.mxu0 %v153_v7  ;;  %vm154_vm1 = vmmov 0   ;;  %v155_v9 = vmov 0   ;;  %v16_v20 = vld [vmem:[%s202_s0] sm:$0xf]  ;;  %s98_s17 = sshll.u32 %s156_s16, 4  ;;  %vm90_vm2 = vcmask 130048   ;;  %s99_s17 = int_to_ptr.vmem [resolvable:$true] %s98_s17 }
   0x4   :  { %v21_v3 = vmul.f32 %v109_v1, %v109_v1  ;;  %v22_v4 = vmul.f32 %v110_v2, %v110_v2  ;;  %115 = vmatprep.mubr.msk.bf16.mxu0 %vm154_vm1, %v153_v7  ;;  %123 = vset.pattern.permute.xlu1 %v155_v9  ;;  %s129_s18 = scalar_lea.vmem %s99_s17, 128  ;;  %p134_p1 = scmp.lt.s32.totalorder %s99_s17, %s99_s17 }
   0x5   :  { %124 = vset.pattern.permute.xlu0 %v155_v9  ;;  %86 = vperm.xlu1 %123, %v83_v8   ;;  %p130_p0 = scmp.ne.s32.totalorder %s99_s17, %s129_s18  ;;  %p135_p2 = scmp.lt.s32.totalorder %s129_s18, %s129_s18 }
   0x6   :  { %v24_v5 = vsel %vm23_vm0, %v21_v3, 0.0  ;;  %v27_v6 = vsel %vm23_vm0, %v22_v4, 0.0 }
   0x7   :  { %25 = vadd.xlane.f32.xlu0 %v24_v5  ;;  %p136_p3 = por %p135_p2, %p134_p1 }
   0x9   :  { %p137_p4 = pnand %p136_p3, %p130_p0 }
   0xb   :  { %28 = vadd.xlane.f32.xlu0 %v27_v6 }
  0x84   :  { %v87_v21 = vpop.permute.xlu1 %86 }
  0x94   :  { %v26_v10 = vpop.xlane.xlu0 %25 }
  0x95   :  { %v30_v11 = vmax.f32 %v26_v10, 1e-24 }
  0x97   :  { %125 = vrsqrt.f32 %v30_v11 }
  0x98   :  { %v29_v12 = vpop.xlane.xlu0 %28 }
  0x99   :  { %v31_v13 = vmax.f32 %v29_v12, 1e-24 }
  0x9b   :  { %127 = vrsqrt.f32 %v31_v13 }
  0xa1   :  { %v126_v14 = vpop.eup %125 }
  0xa2   :  { %v34_v16 = vmul.f32 %v126_v14, %v109_v1 }
  0xa5   :  { %v128_v15 = vpop.eup %127 }
  0xa6   :  { %v35_v17 = vmul.f32 %v128_v15, %v110_v2 }
  0xa8   :  { %v36_v18 = vpack.c.bf16 %v35_v17, %v34_v16 }
  0xaa   :  { %v41_v19 = vsel %vm23_vm0, %v36_v18, 0 }
  0xab   :  { %114 = vmatpush3.bf16.xpose.msra.mxu0 %v41_v19 }
  0xb2   :  { %116 = vmatmul.mubr.msk.bf16.vlgmr.msra.gmra.mrb[0].mxu0 %vm23_vm0, %v16_v20 }
 0x185   :  { %v77_v22 = vpop.f32.mrb[0].mxu0 }
 0x186   :  { %v89_v23 = vmul.f32 %v87_v21, %v77_v22  ;;  %v117_v24 = vpop.f32.mrb[1].mxu0 }
 0x187   :  { %v80_v25 = vpop.f32.mrb[2].mxu0 }
 0x188   :  { %v118_v26 = vpop.f32.mrb[3].mxu0  ;;  %91 = vst.msk [vmem:[#allocation2] sm:$0xff] %vm90_vm2, %v89_v23 }
 0x189   :  { %140 = shalt.err (!%p137_p4)
}
 0x18a   :  { %s141_s20 = scalar_lea.hbm %s205_s3, 128 }
 0x18b   :  { %p142_p5 = scmp.ne.s32.totalorder %s205_s3, %s141_s20  ;;  %p145_p6 = scmp.lt.u32.totalorder %s141_s20, %s205_s3 }
 0x18d   :  { %p147_p7 = pnand %p145_p6, %p142_p5 }
 0x18f   :  { %150 = shalt.err (!%p147_p7)
}
 0x190   :  { %101 = dma.vmem_to_hbm [thread:$0]  %s99_s17, 128, %s205_s3, [#allocation3]  }
 0x191   :  { %151 = dma.done.wait [#allocation3], 128  }
 0x192   :  { %152 = vsyncadd [#allocation3], 4294967168 }
 0x193   :  { %105 = vsyncpa [#allocation3], 1 }

</bundles_post_ra>
